<compile_context>
chip_gen: v7x
topology: tpu7x:2x2x1
jax: 0.10.0
libtpu: 0.0.40
codegen_flags: <defaults>
</compile_context>

<pallas_src>
import jax
import jax.numpy as jnp
from jax import lax
from jax.experimental import pallas as pl
from jax.experimental.pallas import tpu as pltpu


def _scatter_const(noise, lane, idx_ref, start, count, value):
    """noise[lane == idx_ref[start + i]] = value   for i in [0, count)."""
    if count <= 0:
        return noise
    if count <= 8:  # short static loop: unroll at trace time
        for i in range(count):
            noise = jnp.where(lane == idx_ref[start + i], value, noise)
        return noise

    def body(i, nz):
        return jnp.where(lane == idx_ref[start + i], value, nz)

    return lax.fori_loop(0, count, body, noise)


def _make_kernel(n_pepper, n_salt):
    def kernel(idx_ref, img_ref, out_ref):
        # idx_ref: SMEM (max(1, n_pepper+n_salt),) int32 flat pixel indices,
        #          layout [pepper..., salt...]; -1 sentinel when empty.
        # img_ref/out_ref: VMEM (C, TN) tile of the flattened (C, N) image.
        tn = img_ref.shape[-1]
        base = pl.program_id(0) * tn
        # Flat pixel index of every lane in this tile, shape (1, TN).
        lane = lax.broadcasted_iota(jnp.int32, (1, tn), 1) + base

        noise = jnp.zeros((1, tn), jnp.float32)
        noise = _scatter_const(noise, lane, idx_ref, 0, n_pepper, 512.0)
        # Salt written after pepper so it wins on overlap, like the reference.
        noise = _scatter_const(noise, lane, idx_ref, n_pepper, n_salt, -512.0)

        noisy = img_ref[...].astype(jnp.float32) + noise          # (C,TN)+(1,TN)
        out_ref[...] = jnp.clip(noisy, -255.0, 255.0).astype(out_ref.dtype)

    return kernel


def _pick_tile(n_pad, max_lanes=8192):
    """Largest multiple-of-128 tile that divides n_pad (n_pad % 128 == 0)."""
    if n_pad <= max_lanes:
        return n_pad
    t = (max_lanes // 128) * 128
    while t > 128 and n_pad % t != 0:
        t -= 128
    return t


def salt_and_pepper_attack(image, key, salt_prob=0.01, pepper_prob=0.01):
    """image: (C, H, W) float. Returns clamped noisy image, same shape/dtype."""
    c, h, w = image.shape
    total = h * w
    n_salt = int(total * salt_prob)
    n_pepper = int(total * pepper_prob)
    n_idx = n_pepper + n_salt

    # Exact-count permutation (torch.randperm equivalent). This stays in XLA:
    # TODO(synk): an in-kernel pltpu.prng_random_bits Bernoulli would be faster
    # but changes semantics from exact-count to per-pixel probability.
    if n_idx > 0:
        perm = jax.random.permutation(key, total)
        idx = jnp.concatenate(
            [perm[:n_pepper], perm[total - n_salt:]]).astype(jnp.int32)
    else:
        idx = jnp.full((1,), -1, jnp.int32)   # sentinel; in-kernel loops skip

    # Lane-dense layout: (C, H*W), pixel axis padded to a multiple of 128.
    n_pad = ((total + 127) // 128) * 128
    img2 = image.reshape(c, total)
    if n_pad != total:
        img2 = jnp.pad(img2, ((0, 0), (0, n_pad - total)))

    tn = _pick_tile(n_pad)
    grid = (n_pad // tn,)

    itemsize = jnp.dtype(image.dtype).itemsize
    cost = pl.CostEstimate(
        flops=3 * c * n_pad,                        # add + two-sided clamp
        transcendentals=0,
        bytes_accessed=2 * c * n_pad * itemsize + idx.size * 4,
    )

    out2 = pl.pallas_call(
        _make_kernel(n_pepper, n_salt),
        out_shape=jax.ShapeDtypeStruct((c, n_pad), image.dtype),
        grid_spec=pltpu.PrefetchScalarGridSpec(
            num_scalar_prefetch=1,
            grid=grid,
            in_specs=[pl.BlockSpec((c, tn), lambda j, idx_ref: (0, j))],
            out_specs=pl.BlockSpec((c, tn), lambda j, idx_ref: (0, j)),
        ),
        compiler_params=pltpu.CompilerParams(
            dimension_semantics=("parallel",)),
        cost_estimate=cost,
    )(idx, img2)

    return out2[:, :total].reshape(c, h, w)


if __name__ == "__main__":
    key = jax.random.PRNGKey(0)
    k_img, k_noise = jax.random.split(key)

    # C must be 3 (the torch module hard-codes repeat(3, 1, 1)).
    C, H, W = 3, 16, 16
    image = jax.random.uniform(k_img, (C, H, W), jnp.float32,
                               minval=-200.0, maxval=200.0)

    out = salt_and_pepper_attack(image, k_noise,
                                 salt_prob=0.01, pepper_prob=0.01)
    out = jax.block_until_ready(out)

    # Reference (plain JAX, torch semantics) with the same permutation.
    total = H * W
    n_salt = int(total * 0.01)
    n_pepper = int(total * 0.01)
    perm = jax.random.permutation(k_noise, total)
    flat = jnp.zeros((total,), jnp.float32)
    flat = flat.at[perm[:n_pepper]].set(512.0)
    flat = flat.at[perm[total - n_salt:]].set(-512.0)
    ref = jnp.clip(image + flat.reshape(H, W)[None, :, :], -255.0, 255.0)

    assert out.shape == (C, H, W)
    assert out.dtype == image.dtype
    assert jnp.allclose(out, ref, atol=1e-6)

    print("KERNEL_OK")
</pallas_src>

<mosaic_0001>
module attributes {stable_mosaic.version = 11 : i64} {
  func.func @kernel(%arg0: i32, %arg1: memref<4xi32, #tpu.memory_space<smem>>, %arg2: memref<3x256xf32, #tpu.memory_space<vmem>>, %arg3: memref<3x256xf32, #tpu.memory_space<vmem>>) attributes {dimension_semantics = [#tpu.dimension_semantics<parallel>], iteration_bounds = array<i64: 1>, scalar_prefetch = 1 : i64, scratch_operands = 0 : i64, tpu.core_type = #tpu.core_type<tc>, window_params = [{transform_indices = @transform_0, window_bounds = array<i64: 3, 256>}, {transform_indices = @transform_1, window_bounds = array<i64: 3, 256>}]} {
    %c256_i32 = arith.constant 256 : i32
    %0 = arith.muli %arg0, %c256_i32 : i32
    %1 = tpu.iota {dimensions = array<i32: 1>} : vector<1x256xi32>
    %2 = vector.broadcast %0 : i32 to vector<1x256xi32>
    %3 = arith.addi %1, %2 : vector<1x256xi32>
    %cst = arith.constant 0.000000e+00 : f32
    %4 = vector.broadcast %cst : f32 to vector<1x256xf32>
    %c0 = arith.constant 0 : index
    %5 = memref.load %arg1[%c0] : memref<4xi32, #tpu.memory_space<smem>>
    %6 = vector.broadcast %5 : i32 to vector<1x256xi32>
    %7 = arith.cmpi eq, %3, %6 : vector<1x256xi32>
    %cst_0 = arith.constant 5.120000e+02 : f32
    %8 = vector.broadcast %cst_0 : f32 to vector<1x256xf32>
    %9 = arith.select %7, %8, %4 : vector<1x256xi1>, vector<1x256xf32>
    %c1 = arith.constant 1 : index
    %10 = memref.load %arg1[%c1] : memref<4xi32, #tpu.memory_space<smem>>
    %11 = vector.broadcast %10 : i32 to vector<1x256xi32>
    %12 = arith.cmpi eq, %3, %11 : vector<1x256xi32>
    %cst_1 = arith.constant 5.120000e+02 : f32
    %13 = vector.broadcast %cst_1 : f32 to vector<1x256xf32>
    %14 = arith.select %12, %13, %9 : vector<1x256xi1>, vector<1x256xf32>
    %c2 = arith.constant 2 : index
    %15 = memref.load %arg1[%c2] : memref<4xi32, #tpu.memory_space<smem>>
    %16 = vector.broadcast %15 : i32 to vector<1x256xi32>
    %17 = arith.cmpi eq, %3, %16 : vector<1x256xi32>
    %cst_2 = arith.constant -5.120000e+02 : f32
    %18 = vector.broadcast %cst_2 : f32 to vector<1x256xf32>
    %19 = arith.select %17, %18, %14 : vector<1x256xi1>, vector<1x256xf32>
    %c3 = arith.constant 3 : index
    %20 = memref.load %arg1[%c3] : memref<4xi32, #tpu.memory_space<smem>>
    %21 = vector.broadcast %20 : i32 to vector<1x256xi32>
    %22 = arith.cmpi eq, %3, %21 : vector<1x256xi32>
    %cst_3 = arith.constant -5.120000e+02 : f32
    %23 = vector.broadcast %cst_3 : f32 to vector<1x256xf32>
    %24 = arith.select %22, %23, %19 : vector<1x256xi1>, vector<1x256xf32>
    %c0_4 = arith.constant 0 : index
    %c0_5 = arith.constant 0 : index
    %25 = vector.load %arg2[%c0_4, %c0_5] : memref<3x256xf32, #tpu.memory_space<vmem>>, vector<3x256xf32>
    %26 = vector.broadcast %24 : vector<1x256xf32> to vector<3x256xf32>
    %27 = arith.addf %25, %26 : vector<3x256xf32>
    %cst_6 = arith.constant -2.550000e+02 : f32
    %cst_7 = arith.constant 2.550000e+02 : f32
    %28 = vector.broadcast %cst_6 : f32 to vector<3x256xf32>
    %29 = arith.maximumf %28, %27 : vector<3x256xf32>
    %30 = vector.broadcast %cst_7 : f32 to vector<3x256xf32>
    %31 = arith.minimumf %30, %29 : vector<3x256xf32>
    %c0_8 = arith.constant 0 : index
    %c0_9 = arith.constant 0 : index
    %32 = vector.load %arg3[%c0_8, %c0_9] : memref<3x256xf32, #tpu.memory_space<vmem>>, vector<3x256xf32>
    tpu.vector_store %arg3[%c0_8, %c0_9], %31 {strides = array<i32>} : memref<3x256xf32, #tpu.memory_space<vmem>>, vector<3x256xf32>,
    return
  }
  func.func @transform_0(%arg0: i32, %arg1: memref<4xi32, #tpu.memory_space<smem>>) -> (i32, i32) {
    %c0_i32 = arith.constant 0 : i32
    %c0_i32_0 = arith.constant 0 : i32
    return %c0_i32, %arg0 : i32, i32
  }
  func.func @transform_1(%arg0: i32, %arg1: memref<4xi32, #tpu.memory_space<smem>>) -> (i32, i32) {
    %c0_i32 = arith.constant 0 : i32
    %c0_i32_0 = arith.constant 0 : i32
    return %c0_i32, %arg0 : i32, i32
  }
}

</mosaic_0001>

<bundles_post_ra>
// kernel: tpu_custom_call.1
= control target key start
LH: loop header
LB: loop body
LE: loop exit
PB: predicated region body
PF: predicated region fallthrough
CT: control target
= control target key end

     0   :  { %s204_s0 = inlined_call_operand.hbm [shape: s32[4], index: 0, kind: input, shape index: {}]   ;;  %s205_s1 = inlined_call_operand.hbm [shape: f32[3,256], index: 1, kind: input, shape index: {}]   ;;  %s206_s2 = inlined_call_operand.hbm [shape: f32[3,256], index: 2, kind: output, shape index: {}]  }
   0x1   :  { %s89_s11 = scalar_lea.hbm %s204_s0, 16 }
   0x2   :  { %p90_p0 = scmp.ne.s32.totalorder %s204_s0, %s89_s11  ;;  %p93_p1 = scmp.lt.u32.totalorder %s89_s11, %s204_s0 }
   0x4   :  { %p95_p2 = pnand %p93_p1, %p90_p0 }
   0x6   :  { %98 = shalt.err (!%p95_p2)  }
   0x7   :  { %s149_s16 = smov [#allocation3]  }
   0x8   :  { %8 = dma.hbm_to_smem %s204_s0, 16, %s149_s16, [#allocation2] }
   0x9   :  { %143 = dma.done.wait [#allocation2], 16 }
   0xa   :  { %144 = vsyncadd [#allocation2], 4294967280 }
   0xb   :  { %10 = sfence }
   0xc   :  { %11 = vsyncpa [#allocation5], 0 }
   0xd   :  { %12 = vsyncpa [#allocation6], 0  ;;  %s150_s19 = smov [#allocation4]   ;;  %s99_s23 = scalar_lea.hbm %s205_s1, 128 }
   0xe   :  { %s19_s20 = sshll.u32 %s150_s19, 4  ;;  %p100_p3 = scmp.ne.s32.totalorder %s205_s1, %s99_s23  ;;  %s20_s20 = int_to_ptr.vmem [resolvable:$true] %s19_s20 }
   0xf   :  { %p103_p4 = scmp.lt.u32.totalorder %s99_s23, %s205_s1 }
  0x11   :  { %p105_p5 = pnand %p103_p4, %p100_p3 }
  0x13   :  { %108 = shalt.err (!%p105_p5)
}
  0x14   :  { %s109_s0 = scalar_lea.vmem %s20_s20, 128  ;;  %p114_p7 = scmp.lt.s32.totalorder %s20_s20, %s20_s20 }
  0x15   :  { %p110_p6 = scmp.ne.s32.totalorder %s20_s20, %s109_s0  ;;  %p115_p8 = scmp.lt.s32.totalorder %s109_s0, %s109_s0 }
  0x17   :  { %p116_p9 = por %p115_p8, %p114_p7 }
  0x19   :  { %p117_p10 = pnand %p116_p9, %p110_p6 }
  0x1b   :  { %120 = shalt.err (!%p117_p10)
}
  0x1c   :  { %22 = dma.hbm_to_vmem [thread:$0]  %s205_s1, 128, %s20_s20, [#allocation5]  }
  0x1d   :  { %145 = dma.done.wait [#allocation5], 128  }
  0x1e   :  { %146 = vsyncadd [#allocation5], 4294967168  ;;  %v27_v0 = vlaneseq  ;;  %s33_s30 = sld [smem:[#allocation3]]  ;;  %s81_s3 = sld [smem:[#allocation3 + $0x1]]  ;;  %v151_v5 = vmov 0.0  }
  0x1f   :  { %s82_s4 = sld [smem:[#allocation3 + $0x2]]  ;;  %s83_s5 = sld [smem:[#allocation3 + $0x3]]  ;;  %v57_v16 = vld [vmem:[#allocation4] sm:$0x77] }
  0x20   :  { %v28_v1 = vand.u32 127, %v27_v0  ;;  %s152_s1 = smov [#allocation7]  }
  0x21   :  { %s72_s6 = sshll.u32 %s152_s1, 4  ;;  %s73_s6 = int_to_ptr.vmem [resolvable:$true] %s72_s6 }
  0x22   :  { %v29_v2 = vadd.s32 128, %v28_v1  ;;  %s121_s7 = scalar_lea.vmem %s73_s6, 128  ;;  %p126_p12 = scmp.lt.s32.totalorder %s73_s6, %s73_s6 }
  0x23   :  { %p122_p11 = scmp.ne.s32.totalorder %s73_s6, %s121_s7  ;;  %p127_p13 = scmp.lt.s32.totalorder %s121_s7, %s121_s7 }
  0x24   :  { %v34_v3 = vstv %s33_s30  ;;  %v40_v4 = vstv %s81_s3 }
  0x25   :  { %vm35_vm0 = vcmp.eq.s32.totalorder %v28_v1, %v34_v3  ;;  %vm36_vm1 = vcmp.eq.s32.totalorder %v29_v2, %v34_v3  ;;  %vm41_vm2 = vcmp.eq.s32.totalorder %v28_v1, %v40_v4  ;;  %vm42_vm3 = vcmp.eq.s32.totalorder %v29_v2, %v40_v4  ;;  %p128_p0 = por %p127_p13, %p126_p12 }
  0x26   :  { %v37_v6 = vsel %vm35_vm0, 512.0, %v151_v5  ;;  %v38_v7 = vsel %vm36_vm1, 512.0, %v151_v5  ;;  %v46_v8 = vstv %s82_s4  ;;  %v52_v9 = vstv %s83_s5 }
  0x27   :  { %v43_v10 = vsel %vm41_vm2, 512.0, %v37_v6  ;;  %v44_v11 = vsel %vm42_vm3, 512.0, %v38_v7  ;;  %vm47_vm4 = vcmp.eq.s32.totalorder %v28_v1, %v46_v8  ;;  %vm48_vm5 = vcmp.eq.s32.totalorder %v29_v2, %v46_v8  ;;  %p129_p1 = pnand %p128_p0, %p122_p11 }
  0x28   :  { %v49_v12 = vsel %vm47_vm4, -512.0, %v43_v10  ;;  %v50_v13 = vsel %vm48_vm5, -512.0, %v44_v11  ;;  %vm53_vm6 = vcmp.eq.s32.totalorder %v28_v1, %v52_v9  ;;  %vm54_vm7 = vcmp.eq.s32.totalorder %v29_v2, %v52_v9 }
  0x29   :  { %v55_v14 = vsel %vm53_vm6, -512.0, %v49_v12  ;;  %v56_v15 = vsel %vm54_vm7, -512.0, %v50_v13 }
  0x2a   :  { %v60_v17 = vcombine.low %v55_v14, %v56_v15 }
  0x2c   :  { %v62_v18 = vadd.f32 %v60_v17, %v57_v16 }
  0x2e   :  { %v84_v19 = vclamps-f32 %v62_v18, 255.0 }
  0x30   :  { %65 = vst [vmem:[#allocation7] sm:$0x77] %v84_v19 }
  0x31   :  { %132 = shalt.err (!%p129_p1)
}
  0x32   :  { %s133_s10 = scalar_lea.hbm %s206_s2, 128 }
  0x33   :  { %p134_p2 = scmp.ne.s32.totalorder %s206_s2, %s133_s10  ;;  %p137_p3 = scmp.lt.u32.totalorder %s133_s10, %s206_s2 }
  0x35   :  { %p139_p4 = pnand %p137_p3, %p134_p2 }
  0x37   :  { %142 = shalt.err (!%p139_p4)
}
  0x38   :  { %75 = dma.vmem_to_hbm [thread:$0]  %s73_s6, 128, %s206_s2, [#allocation6]  }
  0x39   :  { %147 = dma.done.wait [#allocation6], 128  }
  0x3a   :  { %148 = vsyncadd [#allocation6], 4294967168 }
  0x3b   :  { %79 = vsyncpa [#allocation5], 1 }
  0x3c   :  { %80 = vsyncpa [#allocation6], 1 }

</bundles_post_ra>
